<compile_context>
chip_gen: v7x
topology: tpu7x:2x2x1
jax: 0.10.0
libtpu: 0.0.40
codegen_flags: <defaults>
</compile_context>

<pallas_src>
import jax
import jax.numpy as jnp
from jax.experimental import pallas as pl
from jax.experimental.pallas import tpu as pltpu

NEGATIVE_SLOPE = 0.1
_LANE_WIDTHS = (4096, 2048, 1024, 512, 256, 128)


def _leaky_relu_kernel(x_ref, o_ref):
    x = x_ref[...]
    # max(x, slope*x) == leaky_relu(x, slope) for 0 < slope < 1; one VALU max
    # instead of compare+select. NaN / -0.0 behavior matches the reference.
    o_ref[...] = jnp.maximum(x, x * NEGATIVE_SLOPE)


def _tpu_budget():
    """Returns (vmem_capacity_bytes, max_tile_bytes, two_core_part)."""
    try:
        vmem_capacity = pltpu.get_tpu_info().vmem_capacity_bytes
    except Exception:  # hardware query unavailable -> conservative defaults
        vmem_capacity = 64 << 20
    # 64 MiB-per-core parts (v7x-like) have 2 TensorCores sharing HBM:
    # use smaller tiles and force more grid steps so both cores pipeline.
    two_core_part = vmem_capacity <= (64 << 20)
    max_tile_bytes = (4 << 20) if two_core_part else (8 << 20)
    return vmem_capacity, max_tile_bytes, two_core_part


def _run_2d(x2d, *, vmem_capacity, max_tile_bytes, two_core_part, donate=False):
    """Runs the elementwise kernel over a 2D, lane-dense view."""
    rows, cols = x2d.shape
    dtype = x2d.dtype
    itemsize = jnp.dtype(dtype).itemsize
    sub = max(8, 32 // itemsize)  # dtype-aware sublane multiple (8/16/32)
    total_bytes = rows * cols * itemsize

    # Largest sublane-aligned tile under the per-generation cap.
    tile_rows = max(sub, (max_tile_bytes // (cols * itemsize)) // sub * sub)

    # Minimum pipeline depth: >=4 steps on two-core parts (inputs > 2 MiB),
    # >=2 steps on single-core parts (inputs > 1 MiB) so DMA overlaps compute.
    min_steps = 1
    if two_core_part and total_bytes > (2 << 20):
        min_steps = 4
    elif total_bytes > (1 << 20):
        min_steps = 2
    if min_steps > 1:
        cap = (rows // min_steps) // sub * sub
        if cap >= sub:
            tile_rows = min(tile_rows, cap)

    # Clamp; if the whole array fits in one block, block_shape == array shape
    # (exempt from the (8,128) rule). Otherwise keep blocks sublane-aligned;
    # a ragged last block is handled by Pallas and is safe for elementwise.
    tile_rows = min(tile_rows, rows)
    if tile_rows < rows:
        tile_rows = max(sub, tile_rows // sub * sub)
    grid = (pl.cdiv(rows, tile_rows),)

    tile_bytes = tile_rows * cols * itemsize
    vmem_limit = int(min(vmem_capacity // 2, max(16 << 20, 5 * tile_bytes)))

    return pl.pallas_call(
        _leaky_relu_kernel,
        out_shape=jax.ShapeDtypeStruct((rows, cols), dtype),
        grid_spec=pltpu.PrefetchScalarGridSpec(
            num_scalar_prefetch=0,
            grid=grid,
            in_specs=[pl.BlockSpec((tile_rows, cols), lambda i: (i, 0))],
            out_specs=pl.BlockSpec((tile_rows, cols), lambda i: (i, 0)),
        ),
        compiler_params=pltpu.CompilerParams(
            dimension_semantics=("parallel",),
            vmem_limit_bytes=vmem_limit),
        # Aliasing reuses the input buffer (saves an output allocation);
        # HBM traffic (1 read + 1 write) is unchanged.
        input_output_aliases=({0: 0} if donate else {}),
    )(x2d)


def leaky_relu(x: jax.Array, *, donate_input: bool = False) -> jax.Array:
    """Elementwise LeakyReLU, semantics matching F.leaky_relu(x, 0.1)."""
    orig_shape = x.shape
    n = x.size
    if n == 0:
        return x
    itemsize = jnp.dtype(x.dtype).itemsize
    vmem_capacity, max_tile_bytes, two_core_part = _tpu_budget()
    budget = dict(vmem_capacity=vmem_capacity, max_tile_bytes=max_tile_bytes,
                  two_core_part=two_core_part)

    # 1) Exact lane-dense fold: any 128-multiple lane width dividing n.
    #    (No sublane-alignment requirement on rows; ragged last block is OK.)
    cols = next((c for c in _LANE_WIDTHS if n % c == 0), None)
    if cols is not None:
        out2d = _run_2d(x.reshape(n // cols, cols), donate=donate_input, **budget)
        return out2d.reshape(orig_shape)

    # 2) n not a multiple of 128, but small: single full-array block
    #    (block_shape == array shape is exempt from the (8,128) rule).
    if n * itemsize <= max_tile_bytes:
        out2d = _run_2d(x.reshape(1, n), donate=donate_input, **budget)
        return out2d.reshape(orig_shape)

    # 3) Large and not a multiple of 128: kernel over the 128-aligned bulk,
    #    tiny (<4096-element) tail in plain XLA. No full-array pad/slice.
    cols = next(c for c in _LANE_WIDTHS if c <= n)
    bulk = (n // cols) * cols
    flat = jnp.ravel(x)
    head = _run_2d(flat[:bulk].reshape(bulk // cols, cols), **budget).reshape(-1)
    tail = flat[bulk:]
    tail = jnp.maximum(tail, tail * NEGATIVE_SLOPE)
    return jnp.concatenate([head, tail]).reshape(orig_shape)


if __name__ == "__main__":
    key = jax.random.PRNGKey(0)

    # Primary shape implied by the module usage (NCHW batch=2, channels=4, 16x16).
    x = jax.random.normal(key, (2, 4, 16, 16), dtype=jnp.float32)
    out = leaky_relu(x)
    jax.block_until_ready(out)
    ref = jnp.where(x >= 0, x, x * NEGATIVE_SLOPE)
    assert out.shape == x.shape and out.dtype == x.dtype
    assert jnp.allclose(out, ref, atol=1e-6), "mismatch vs reference (exact-fold path)"

    # Small shape whose element count is not a multiple of 128 (full-block path).
    y = jax.random.normal(jax.random.PRNGKey(1), (3, 5, 7), dtype=jnp.float32)
    out_y = leaky_relu(y)
    jax.block_until_ready(out_y)
    ref_y = jnp.where(y >= 0, y, y * NEGATIVE_SLOPE)
    assert jnp.allclose(out_y, ref_y, atol=1e-6), "mismatch vs reference (odd-size path)"

    print("KERNEL_OK")
</pallas_src>

<mosaic_0001>
module attributes {stable_mosaic.version = 11 : i64} {
  func.func @_leaky_relu_kernel(%arg0: i32, %arg1: memref<1x2048xf32, #tpu.memory_space<vmem>>, %arg2: memref<1x2048xf32, #tpu.memory_space<vmem>>) attributes {dimension_semantics = [#tpu.dimension_semantics<parallel>], iteration_bounds = array<i64: 1>, scalar_prefetch = 0 : i64, scratch_operands = 0 : i64, tpu.core_type = #tpu.core_type<tc>, window_params = [{transform_indices = @transform_0, window_bounds = array<i64: 1, 2048>}, {transform_indices = @transform_1, window_bounds = array<i64: 1, 2048>}]} {
    %c0 = arith.constant 0 : index
    %c0_0 = arith.constant 0 : index
    %0 = vector.load %arg1[%c0, %c0_0] : memref<1x2048xf32, #tpu.memory_space<vmem>>, vector<1x2048xf32>
    %cst = arith.constant 1.000000e-01 : f32
    %1 = vector.broadcast %cst : f32 to vector<1x2048xf32>
    %2 = arith.mulf %0, %1 : vector<1x2048xf32>
    %3 = arith.maximumf %0, %2 : vector<1x2048xf32>
    %c0_1 = arith.constant 0 : index
    %c0_2 = arith.constant 0 : index
    %4 = vector.load %arg2[%c0_1, %c0_2] : memref<1x2048xf32, #tpu.memory_space<vmem>>, vector<1x2048xf32>
    tpu.vector_store %arg2[%c0_1, %c0_2], %3 {strides = array<i32>} : memref<1x2048xf32, #tpu.memory_space<vmem>>, vector<1x2048xf32>,
    return
  }
  func.func @transform_0(%arg0: i32) -> (i32, i32) {
    %c0_i32 = arith.constant 0 : i32
    %c0_i32_0 = arith.constant 0 : i32
    return %arg0, %c0_i32 : i32, i32
  }
  func.func @transform_1(%arg0: i32) -> (i32, i32) {
    %c0_i32 = arith.constant 0 : i32
    %c0_i32_0 = arith.constant 0 : i32
    return %arg0, %c0_i32 : i32, i32
  }
}

</mosaic_0001>

<bundles_post_ra>
// kernel: tpu_custom_call.1
= control target key start
LH: loop header
LB: loop body
LE: loop exit
PB: predicated region body
PF: predicated region fallthrough
CT: control target
= control target key end

     0   :  { %6 = vsyncpa [#allocation3], 0  ;;  %s130_s0 = inlined_call_operand.hbm [shape: f32[1,2048], index: 0, kind: input, shape index: {}]   ;;  %s131_s1 = inlined_call_operand.hbm [shape: f32[1,2048], index: 1, kind: output, shape index: {}]  }
   0x1   :  { %7 = vsyncpa [#allocation4], 0  ;;  %s94_s6 = smov [#allocation2]   ;;  %s46_s10 = scalar_lea.hbm %s130_s0, 256 }
   0x2   :  { %s14_s7 = sshll.u32 %s94_s6, 4  ;;  %p47_p0 = scmp.ne.s32.totalorder %s130_s0, %s46_s10  ;;  %s15_s7 = int_to_ptr.vmem [resolvable:$true] %s14_s7 }
   0x3   :  { %p50_p1 = scmp.lt.u32.totalorder %s46_s10, %s130_s0 }
   0x5   :  { %p52_p2 = pnand %p50_p1, %p47_p0 }
   0x7   :  { %55 = shalt.err (!%p52_p2)
}
   0x8   :  { %s56_s15 = scalar_lea.vmem %s15_s7, 256  ;;  %p61_p4 = scmp.lt.s32.totalorder %s15_s7, %s15_s7 }
   0x9   :  { %p57_p3 = scmp.ne.s32.totalorder %s15_s7, %s56_s15  ;;  %p62_p5 = scmp.lt.s32.totalorder %s56_s15, %s56_s15 }
   0xb   :  { %p63_p6 = por %p62_p5, %p61_p4 }
   0xd   :  { %p64_p7 = pnand %p63_p6, %p57_p3 }
   0xf   :  { %67 = shalt.err (!%p64_p7)
}
  0x10   :  { %17 = dma.hbm_to_vmem [thread:$0]  %s130_s0, 256, %s15_s7, [#allocation3]  }
  0x11   :  { %90 = dma.done.wait [#allocation3], 256  }
  0x12   :  { %91 = vsyncadd [#allocation3], 4294967040  ;;  %v21_v0 = vld [vmem:[#allocation2] sm:$0xff]  ;;  %v22_v1 = vld [vmem:[#allocation2 + $0x8] sm:$0xff]  ;;  %s95_s18 = smov [#allocation5]  }
  0x13   :  { %s35_s19 = sshll.u32 %s95_s18, 4  ;;  %v23_v2 = vmul.f32 0.1, %v21_v0  ;;  %v24_v3 = vmul.f32 0.1, %v22_v1  ;;  %s36_s19 = int_to_ptr.vmem [resolvable:$true] %s35_s19 }
  0x14   :  { %s68_s20 = scalar_lea.vmem %s36_s19, 256  ;;  %p73_p9 = scmp.lt.s32.totalorder %s36_s19, %s36_s19 }
  0x15   :  { %v25_v4 = vmax.f32 %v21_v0, %v23_v2  ;;  %v26_v5 = vmax.f32 %v22_v1, %v24_v3  ;;  %p69_p8 = scmp.ne.s32.totalorder %s36_s19, %s68_s20  ;;  %p74_p10 = scmp.lt.s32.totalorder %s68_s20, %s68_s20 }
  0x17   :  { %27 = vst [vmem:[#allocation5] sm:$0xff] %v25_v4  ;;  %28 = vst [vmem:[#allocation5 + $0x8] sm:$0xff] %v26_v5  ;;  %p75_p11 = por %p74_p10, %p73_p9 }
  0x19   :  { %p76_p12 = pnand %p75_p11, %p69_p8 }
  0x1b   :  { %79 = shalt.err (!%p76_p12)
}
  0x1c   :  { %s80_s22 = scalar_lea.hbm %s131_s1, 256 }
  0x1d   :  { %p81_p13 = scmp.ne.s32.totalorder %s131_s1, %s80_s22  ;;  %p84_p0 = scmp.lt.u32.totalorder %s80_s22, %s131_s1 }
  0x1f   :  { %p86_p1 = pnand %p84_p0, %p81_p13 }
  0x21   :  { %89 = shalt.err (!%p86_p1)
}
  0x22   :  { %38 = dma.vmem_to_hbm [thread:$0]  %s36_s19, 256, %s131_s1, [#allocation4]  }
  0x23   :  { %92 = dma.done.wait [#allocation4], 256  }
  0x24   :  { %93 = vsyncadd [#allocation4], 4294967040 }
  0x25   :  { %42 = vsyncpa [#allocation3], 1 }
  0x26   :  { %43 = vsyncpa [#allocation4], 1 }

</bundles_post_ra>
